<compile_context>
chip_gen: v6e
topology: v6e:2x2x1
jax: 0.10.0
libtpu: 0.0.40
codegen_flags: <defaults>
</compile_context>

<pallas_src>
import jax
import jax.numpy as jnp
from jax.experimental import pallas as pl
from jax.experimental.pallas import tpu as pltpu

INPUT_LAYER_NEURONS = 64
OUTPUT_LAYER_NEURONS = 10
HIDDEN_UNITS = (256, 128)
PADDED_OUT = 128           # lane-dense final width (>= OUTPUT_LAYER_NEURONS)
NEG_BIG = -1e30            # mask value for padded logit columns (f32 path)
TARGET_TILE = 2048         # target rows per grid step (VMEM-safe on v7x too)


def _round_up(n, m):
    return ((n + m - 1) // m) * m


def mlp_kernel(x_ref, w1_ref, b1_ref, w2_ref, b2_ref, w3_ref, b3_ref, o_ref):
    # In-kernel bf16 cast of the f32 input tile (near-free VPU pack); avoids a
    # separate wrapper-side XLA cast pass over x.
    x = x_ref[...].astype(jnp.bfloat16)

    # Layer 1: Linear(64->256) + Sigmoid.  bf16 MXU inputs, f32 accumulation.
    h = jnp.dot(x, w1_ref[...], preferred_element_type=jnp.float32)
    h = h + b1_ref[...]                        # [1,N] row sublane-broadcast
    h = 0.5 * jnp.tanh(0.5 * h) + 0.5          # sigmoid via tanh: 1 EUP op

    # Dropout -> identity (eval mode).

    # Layer 2: Linear(256->128) + Sigmoid.
    h = jnp.dot(h.astype(jnp.bfloat16), w2_ref[...],
                preferred_element_type=jnp.float32)
    h = h + b2_ref[...]
    h = 0.5 * jnp.tanh(0.5 * h) + 0.5

    # Layer 3: Linear(128 -> 128 padded).  Padded weight columns are zero and
    # padded bias columns are -1e30, so padded logits vanish under softmax.
    logits = jnp.dot(h.astype(jnp.bfloat16), w3_ref[...],
                     preferred_element_type=jnp.float32)
    logits = logits + b3_ref[...]

    # Numerically-stable softmax over the lane-dense feature axis.
    # Exact divide for the final normalization (negligible cost per row).
    m = jnp.max(logits, axis=-1, keepdims=True)
    e = jnp.exp(logits - m)
    denom = jnp.sum(e, axis=-1, keepdims=True)
    o_ref[...] = (e / denom).astype(o_ref.dtype)


def prepare_params(params):
    """One-time parameter prep (hoisted off the hot path): bf16 weight casts
    and lane-dense padding of the final layer."""
    w1, b1, w2, b2, w3, b3 = params
    pad_n = PADDED_OUT - OUTPUT_LAYER_NEURONS
    w3p = jnp.pad(w3.astype(jnp.bfloat16), ((0, 0), (0, pad_n)))
    b3p = jnp.pad(b3, ((0, 0), (0, pad_n)), constant_values=NEG_BIG)
    return (w1.astype(jnp.bfloat16), b1,
            w2.astype(jnp.bfloat16), b2,
            w3p, b3p)


def mlp_forward(x, prepared):
    """x: [batch, 64] f32 -> [batch, 10] f32 softmax probabilities."""
    w1b, b1, w2b, b2, w3p, b3p = prepared
    batch = x.shape[0]

    # Tile/grid selection: choose the number of tiles first so there are
    # always >=2 (even) grid steps (both v7x TensorCores stay busy), then size
    # the tile as a multiple of 16 (bf16 sublane pack) minimizing batch pad.
    n_tiles = max(2, pl.cdiv(batch, TARGET_TILE))
    if n_tiles % 2:
        n_tiles += 1
    tile_b = _round_up(pl.cdiv(batch, n_tiles), 16)
    padded_batch = n_tiles * tile_b
    if padded_batch != batch:
        x = jnp.pad(x, ((0, padded_batch - batch), (0, 0)))
    grid = (n_tiles,)

    const_map = lambda i: (0, 0)
    in_specs = [
        pl.BlockSpec((tile_b, INPUT_LAYER_NEURONS), lambda i: (i, 0)),
        pl.BlockSpec(w1b.shape, const_map),
        pl.BlockSpec(b1.shape, const_map),
        pl.BlockSpec(w2b.shape, const_map),
        pl.BlockSpec(b2.shape, const_map),
        pl.BlockSpec(w3p.shape, const_map),
        pl.BlockSpec(b3p.shape, const_map),
    ]
    out_specs = pl.BlockSpec((tile_b, PADDED_OUT), lambda i: (i, 0))

    flops = 2 * padded_batch * (64 * 256 + 256 * 128 + 128 * PADDED_OUT)
    transcendentals = padded_batch * (256 + 128 + PADDED_OUT)
    bytes_accessed = (
        x.size * 4                                   # f32 input read
        + padded_batch * PADDED_OUT * 2              # bf16 output write
        + (w1b.size + w2b.size + w3p.size) * 2       # bf16 weights
        + (b1.size + b2.size + b3p.size) * 4         # f32 biases
    )

    out = pl.pallas_call(
        mlp_kernel,
        out_shape=jax.ShapeDtypeStruct((padded_batch, PADDED_OUT), jnp.bfloat16),
        grid=grid,
        in_specs=in_specs,
        out_specs=out_specs,
        compiler_params=pltpu.CompilerParams(
            dimension_semantics=("parallel",),
            # Budgeted for v7x (64 MiB physical VMEM): double-buffered tiles
            # (~2 MiB) + f32 intermediates + resident weights stay well under.
            vmem_limit_bytes=48 * 1024 * 1024,
        ),
        cost_estimate=pl.CostEstimate(
            flops=flops,
            transcendentals=transcendentals,
            bytes_accessed=bytes_accessed,
        ),
    )(x, w1b, b1, w2b, b2, w3p, b3p)

    # Slice back to the logical [batch, 10] result (bf16 -> f32 for consumers).
    return out[:batch, :OUTPUT_LAYER_NEURONS].astype(jnp.float32)


def init_params(key):
    """Deterministic init matching the PyTorch module's _initialize_weights:
    weights ~ N(0, 0.1), biases = 0. Weights stored as [in, out]."""
    dims = [INPUT_LAYER_NEURONS, *HIDDEN_UNITS, OUTPUT_LAYER_NEURONS]
    params = []
    keys = jax.random.split(key, len(dims) - 1)
    for k, (din, dout) in zip(keys, zip(dims, dims[1:])):
        w = 0.1 * jax.random.normal(k, (din, dout), dtype=jnp.float32)
        b = jnp.zeros((1, dout), dtype=jnp.float32)
        params.append(w)
        params.append(b)
    return tuple(params)


def reference_forward(x, params):
    """Pure-JAX f32 reference (eval-mode dropout == identity)."""
    w1, b1, w2, b2, w3, b3 = params
    h = jax.nn.sigmoid(x @ w1 + b1)
    h = jax.nn.sigmoid(h @ w2 + b2)
    logits = h @ w3 + b3
    return jax.nn.softmax(logits, axis=-1)


if __name__ == "__main__":
    key = jax.random.PRNGKey(0)
    k_x, k_p = jax.random.split(key)

    batch = 8
    x = jax.random.normal(k_x, (batch, INPUT_LAYER_NEURONS), dtype=jnp.float32)
    params = init_params(k_p)
    prepared = prepare_params(params)

    out = jax.block_until_ready(mlp_forward(x, prepared))
    ref = reference_forward(x, params)

    assert out.shape == (batch, OUTPUT_LAYER_NEURONS)
    # Softmax rows sum to ~1 (bf16 output store => loose-but-tight tolerance).
    row_sums = jnp.sum(out, axis=1)
    assert bool(jnp.all(jnp.abs(row_sums - 1.0) < 4e-2))
    # Matches the f32 reference within bf16-matmul/bf16-output tolerance.
    assert bool(jnp.all(jnp.abs(out - ref) < 4e-2))

    print("KERNEL_OK")
</pallas_src>

<mosaic_0001>
module attributes {stable_mosaic.version = 11 : i64} {
  func.func @mlp_kernel(%arg0: i32, %arg1: memref<16x64xf32, #tpu.memory_space<vmem>>, %arg2: memref<64x256xbf16, #tpu.memory_space<vmem>>, %arg3: memref<1x256xf32, #tpu.memory_space<vmem>>, %arg4: memref<256x128xbf16, #tpu.memory_space<vmem>>, %arg5: memref<1x128xf32, #tpu.memory_space<vmem>>, %arg6: memref<128x128xbf16, #tpu.memory_space<vmem>>, %arg7: memref<1x128xf32, #tpu.memory_space<vmem>>, %arg8: memref<16x128xbf16, #tpu.memory_space<vmem>>) attributes {dimension_semantics = [#tpu.dimension_semantics<parallel>], iteration_bounds = array<i64: 2>, scalar_prefetch = 0 : i64, scratch_operands = 0 : i64, tpu.core_type = #tpu.core_type<tc>, window_params = [{transform_indices = @transform_0, window_bounds = array<i64: 16, 64>}, {pipeline_mode = #tpu.pipeline_mode<synchronous>, transform_indices = @transform_1, window_bounds = array<i64: 64, 256>}, {pipeline_mode = #tpu.pipeline_mode<synchronous>, transform_indices = @transform_2, window_bounds = array<i64: 1, 256>}, {pipeline_mode = #tpu.pipeline_mode<synchronous>, transform_indices = @transform_3, window_bounds = array<i64: 256, 128>}, {pipeline_mode = #tpu.pipeline_mode<synchronous>, transform_indices = @transform_4, window_bounds = array<i64: 1, 128>}, {pipeline_mode = #tpu.pipeline_mode<synchronous>, transform_indices = @transform_5, window_bounds = array<i64: 128, 128>}, {pipeline_mode = #tpu.pipeline_mode<synchronous>, transform_indices = @transform_6, window_bounds = array<i64: 1, 128>}, {transform_indices = @transform_7, window_bounds = array<i64: 16, 128>}]} {
    %c0 = arith.constant 0 : index
    %c0_0 = arith.constant 0 : index
    %0 = vector.load %arg1[%c0, %c0_0] : memref<16x64xf32, #tpu.memory_space<vmem>>, vector<16x64xf32>
    %1 = arith.truncf %0 : vector<16x64xf32> to vector<16x64xbf16>
    %c0_1 = arith.constant 0 : index
    %c0_2 = arith.constant 0 : index
    %2 = vector.load %arg2[%c0_1, %c0_2] : memref<64x256xbf16, #tpu.memory_space<vmem>>, vector<64x256xbf16>
    %cst = arith.constant dense<0.000000e+00> : vector<16x256xf32>
    %3 = tpu.matmul %1, %2, %cst {dimension_numbers = #tpu.dot_dimension_numbers<[1], [0], [0], [1], [0, 0, 1, 1], [], []>} : vector<16x64xbf16>, vector<64x256xbf16>, vector<16x256xf32> -> vector<16x256xf32>
    %c0_3 = arith.constant 0 : index
    %c0_4 = arith.constant 0 : index
    %4 = vector.load %arg3[%c0_3, %c0_4] : memref<1x256xf32, #tpu.memory_space<vmem>>, vector<1x256xf32>
    %5 = vector.broadcast %4 : vector<1x256xf32> to vector<16x256xf32>
    %6 = arith.addf %3, %5 : vector<16x256xf32>
    %cst_5 = arith.constant 5.000000e-01 : f32
    %7 = vector.broadcast %cst_5 : f32 to vector<16x256xf32>
    %8 = arith.mulf %7, %6 : vector<16x256xf32>
    %9 = math.tanh %8 : vector<16x256xf32>
    %cst_6 = arith.constant 5.000000e-01 : f32
    %10 = vector.broadcast %cst_6 : f32 to vector<16x256xf32>
    %11 = arith.mulf %10, %9 : vector<16x256xf32>
    %cst_7 = arith.constant 5.000000e-01 : f32
    %12 = vector.broadcast %cst_7 : f32 to vector<16x256xf32>
    %13 = arith.addf %11, %12 : vector<16x256xf32>
    %14 = arith.truncf %13 : vector<16x256xf32> to vector<16x256xbf16>
    %c0_8 = arith.constant 0 : index
    %c0_9 = arith.constant 0 : index
    %15 = vector.load %arg4[%c0_8, %c0_9] : memref<256x128xbf16, #tpu.memory_space<vmem>>, vector<256x128xbf16>
    %cst_10 = arith.constant dense<0.000000e+00> : vector<16x128xf32>
    %16 = tpu.matmul %14, %15, %cst_10 {dimension_numbers = #tpu.dot_dimension_numbers<[1], [0], [0], [1], [0, 0, 1, 1], [], []>} : vector<16x256xbf16>, vector<256x128xbf16>, vector<16x128xf32> -> vector<16x128xf32>
    %c0_11 = arith.constant 0 : index
    %c0_12 = arith.constant 0 : index
    %17 = vector.load %arg5[%c0_11, %c0_12] : memref<1x128xf32, #tpu.memory_space<vmem>>, vector<1x128xf32>
    %18 = vector.broadcast %17 : vector<1x128xf32> to vector<16x128xf32>
    %19 = arith.addf %16, %18 : vector<16x128xf32>
    %cst_13 = arith.constant 5.000000e-01 : f32
    %20 = vector.broadcast %cst_13 : f32 to vector<16x128xf32>
    %21 = arith.mulf %20, %19 : vector<16x128xf32>
    %22 = math.tanh %21 : vector<16x128xf32>
    %cst_14 = arith.constant 5.000000e-01 : f32
    %23 = vector.broadcast %cst_14 : f32 to vector<16x128xf32>
    %24 = arith.mulf %23, %22 : vector<16x128xf32>
    %cst_15 = arith.constant 5.000000e-01 : f32
    %25 = vector.broadcast %cst_15 : f32 to vector<16x128xf32>
    %26 = arith.addf %24, %25 : vector<16x128xf32>
    %27 = arith.truncf %26 : vector<16x128xf32> to vector<16x128xbf16>
    %c0_16 = arith.constant 0 : index
    %c0_17 = arith.constant 0 : index
    %28 = vector.load %arg6[%c0_16, %c0_17] : memref<128x128xbf16, #tpu.memory_space<vmem>>, vector<128x128xbf16>
    %cst_18 = arith.constant dense<0.000000e+00> : vector<16x128xf32>
    %29 = tpu.matmul %27, %28, %cst_18 {dimension_numbers = #tpu.dot_dimension_numbers<[1], [0], [0], [1], [0, 0, 1, 1], [], []>} : vector<16x128xbf16>, vector<128x128xbf16>, vector<16x128xf32> -> vector<16x128xf32>
    %c0_19 = arith.constant 0 : index
    %c0_20 = arith.constant 0 : index
    %30 = vector.load %arg7[%c0_19, %c0_20] : memref<1x128xf32, #tpu.memory_space<vmem>>, vector<1x128xf32>
    %31 = vector.broadcast %30 : vector<1x128xf32> to vector<16x128xf32>
    %32 = arith.addf %29, %31 : vector<16x128xf32>
    %cst_21 = arith.constant dense<0xFF800000> : vector<16xf32>
    %33 = vector.multi_reduction <maximumf>, %32, %cst_21 [1] : vector<16x128xf32> to vector<16xf32>
    %34 = vector.shape_cast %33 : vector<16xf32> to vector<16x1xf32>
    %35 = vector.broadcast %34 : vector<16x1xf32> to vector<16x128xf32>
    %36 = arith.subf %32, %35 : vector<16x128xf32>
    %37 = math.exp %36 : vector<16x128xf32>
    %cst_22 = arith.constant dense<0.000000e+00> : vector<16xf32>
    %38 = vector.multi_reduction <add>, %37, %cst_22 [1] : vector<16x128xf32> to vector<16xf32>
    %39 = vector.shape_cast %38 : vector<16xf32> to vector<16x1xf32>
    %40 = vector.broadcast %39 : vector<16x1xf32> to vector<16x128xf32>
    %41 = arith.divf %37, %40 : vector<16x128xf32>
    %42 = arith.truncf %41 : vector<16x128xf32> to vector<16x128xbf16>
    %c0_23 = arith.constant 0 : index
    %c0_24 = arith.constant 0 : index
    %43 = vector.load %arg8[%c0_23, %c0_24] : memref<16x128xbf16, #tpu.memory_space<vmem>>, vector<16x128xbf16>
    tpu.vector_store %arg8[%c0_23, %c0_24], %42 {strides = array<i32>} : memref<16x128xbf16, #tpu.memory_space<vmem>>, vector<16x128xbf16>,
    return
  }
  func.func @transform_0(%arg0: i32) -> (i32, i32) {
    %c0_i32 = arith.constant 0 : i32
    %c0_i32_0 = arith.constant 0 : i32
    return %arg0, %c0_i32 : i32, i32
  }
  func.func @transform_1(%arg0: i32) -> (i32, i32) {
    %c0_i32 = arith.constant 0 : i32
    %c0_i32_0 = arith.constant 0 : i32
    %c0_i32_1 = arith.constant 0 : i32
    return %c0_i32, %c0_i32_0 : i32, i32
  }
  func.func @transform_2(%arg0: i32) -> (i32, i32) {
    %c0_i32 = arith.constant 0 : i32
    %c0_i32_0 = arith.constant 0 : i32
    %c0_i32_1 = arith.constant 0 : i32
    return %c0_i32, %c0_i32_0 : i32, i32
  }
  func.func @transform_3(%arg0: i32) -> (i32, i32) {
    %c0_i32 = arith.constant 0 : i32
    %c0_i32_0 = arith.constant 0 : i32
    %c0_i32_1 = arith.constant 0 : i32
    return %c0_i32, %c0_i32_0 : i32, i32
  }
  func.func @transform_4(%arg0: i32) -> (i32, i32) {
    %c0_i32 = arith.constant 0 : i32
    %c0_i32_0 = arith.constant 0 : i32
    %c0_i32_1 = arith.constant 0 : i32
    return %c0_i32, %c0_i32_0 : i32, i32
  }
  func.func @transform_5(%arg0: i32) -> (i32, i32) {
    %c0_i32 = arith.constant 0 : i32
    %c0_i32_0 = arith.constant 0 : i32
    %c0_i32_1 = arith.constant 0 : i32
    return %c0_i32, %c0_i32_0 : i32, i32
  }
  func.func @transform_6(%arg0: i32) -> (i32, i32) {
    %c0_i32 = arith.constant 0 : i32
    %c0_i32_0 = arith.constant 0 : i32
    %c0_i32_1 = arith.constant 0 : i32
    return %c0_i32, %c0_i32_0 : i32, i32
  }
  func.func @transform_7(%arg0: i32) -> (i32, i32) {
    %c0_i32 = arith.constant 0 : i32
    %c0_i32_0 = arith.constant 0 : i32
    return %arg0, %c0_i32 : i32, i32
  }
}

</mosaic_0001>

<bundles_post_ra>
// kernel: tpu_custom_call.1
= control target key start
LH: loop header
LB: loop body
LE: loop exit
PB: predicated region body
PF: predicated region fallthrough
CT: control target
= control target key end

     0   :  { %s1622_s0 = inlined_call_operand.hbm [shape: f32[32,64], index: 0, kind: input, shape index: {}]   ;;  %s1623_s1 = inlined_call_operand.hbm [shape: bf16[64,256], index: 1, kind: input, shape index: {}]   ;;  %s1624_s2 = inlined_call_operand.vmem [shape: f32[1,256], index: 2, kind: input, shape index: {}]   ;;  %s1625_s3 = inlined_call_operand.hbm [shape: bf16[256,128], index: 3, kind: input, shape index: {}]   ;;  %s1626_s4 = inlined_call_operand.vmem [shape: f32[1,128], index: 4, kind: input, shape index: {}]   ;;  %s1627_s5 = inlined_call_operand.hbm [shape: bf16[128,128], index: 5, kind: input, shape index: {}]   ;;  %s1628_s6 = inlined_call_operand.vmem [shape: f32[1,128], index: 6, kind: input, shape index: {}]   ;;  %s1629_s7 = inlined_call_operand.hbm [shape: bf16[32,128], index: 7, kind: output, shape index: {}]  }
   0x1   :  { %1636 = sst [smem:[#allocation15_spill]] %s1623_s1 }
   0x2   :  { %12 = vsyncpa [#allocation3], 0 }
   0x3   :  { %14 = vsyncpa [#allocation3 + $0x1], 0 }
   0x4   :  { %15 = vsyncpa [#allocation6], 0 }
   0x5   :  { %16 = vsyncpa [#allocation9], 0 }
   0x6   :  { %17 = vsyncpa [#allocation4], 0 }
   0x7   :  { %19 = vsyncpa [#allocation4 + $0x1], 0  ;;  %s1406_s24 = smov 0   ;;  %s1408_s25 = smov 0  }
   0x8   :  { %s1410_s26 = smov 0   ;;  %s1412_s27 = smov 0  }
   0x9 LB: > { %s1427_s28 = sadd.s32 4294967295, %s1350_s27   ;;  %s913_s29 = sadd.s32 4294967294, %s1350_s27   ;;  %s1350_s27 = sphi %s1412_s27, %s1658_s27   ;;  %s1346_s26 = sphi %s1410_s26, %s1657_s26   ;;  %s1342_s25 = sphi %s1408_s25, %s1656_s25   ;;  %s1338_s24 = sphi %s1406_s24, %s1655_s24  }
   0xa   : > { %p45_p0 = scmp.ne.s32.totalorder %s1342_s25, %s1338_s24  ;;  %p1631_p1 = scmp.eq.s32.totalorder %s1427_s28, 0 }
   0xb   : > { %p195_p2 = scmp.eq.s32.totalorder %s1427_s28, 1  ;;  %p201_p3 = scmp.eq.s32.totalorder %s913_s29, 1 }
   0xc   : > { %p1436_p4 = por %p1631_p1, %p45_p0  ;;  %p914_p5 = scmp.ge.s32.totalorder %s1350_s27, 1 }
   0xd   : > { %p1441_p6 = por %p201_p3, %p45_p0  ;;  %p208_p7 = scmp.lt.s32.totalorder %s1350_s27, 3 }
   0xe   : > { %s1637_s30 = scalar_select %p1436_p4, 1, 0 }
   0xf   : > { %s1638_s8 = scalar_select %p1441_p6, 1, 0 }
  0x10   : > { %p1446_p8 = pnand %p914_p5, %p208_p7  ;;  %s1352_s10 = smov [#allocation5]  }
  0x11   : > { %s220_s11 = sshll.u32 %s1352_s10, 4  ;;  %s1353_s13 = smov [#allocation7]   ;;  %s221_s11 = int_to_ptr.vmem [resolvable:$true] %s220_s11 }
  0x12   : > { %s1639_s9 = scalar_select %p1446_p8, 1, 0 }
  0x13   : > { %p1046_p9 = pneg %p1446_p8  ;;  %s236_s14 = sshll.u32 %s1353_s13, 4  ;;  %s237_s14 = int_to_ptr.vmem [resolvable:$true] %s236_s14 }
  0x14   : > { %s1183_s15 = scalar_lea.vmem %s221_s11, 1024  ;;  %p1191_p5 = scmp.lt.s32.totalorder %s221_s11, %s221_s11 }
  0x15   : > { %p1455_p11 = pnand %p1046_p9, %p1631_p1  ;;  %p1184_p13 = scmp.ne.s32.totalorder %s221_s11, %s1183_s15 }
  0x16   : > { %p1192_p7 = scmp.lt.s32.totalorder %s1183_s15, %s1183_s15 }
  0x17   : > { %p1174_p12 = pneg %p1455_p11 }
  0x18   : > { %p1193_p10 = por %p1192_p7, %p1191_p5 }
  0x19   : > { %p1186_p0 = pnand %p1184_p13, %p1174_p12 }
  0x1b   : > { %p1187_p3 = pneg %p1186_p0 }
  0x1d   : > { %p1194_p9 = pnand %p1193_p10, %p1187_p3 }
  0x1f   : > { %1197 = shalt.err (!%p1194_p9)
}
  0x20   : > { %s1630_s16 = smov 128   ;;  %s1632_s17 = smov 8  }
  0x21   : > { %s1641_s1 = sld [smem:[#allocation15_spill]]  ;;  %s1209_s20 = scalar_lea.vmem %s237_s14, 2048 }
  0x22   : > { %p1210_p13 = scmp.ne.s32.totalorder %s237_s14, %s1209_s20  ;;  %p1217_p10 = scmp.lt.s32.totalorder %s237_s14, %s237_s14 }
  0x23   : > { %p1218_p3 = scmp.lt.s32.totalorder %s1209_s20, %s1209_s20 }
  0x24   : > { %p1212_p0 = pnand %p1210_p13, %p1174_p12 }
  0x25   : > { %p1219_p7 = por %p1218_p3, %p1217_p10 }
  0x26   : > { %p1213_p5 = pneg %p1212_p0 }
  0x27   : > { %1049 = dma.hbm_to_vmem [thread:$0]  (!%p1455_p11), %s1641_s1, 1024, %s221_s11, [#allocation6], %s1630_s16, %s1630_s16, %s1632_s17  }
  0x28   : > { %p1220_p9 = pnand %p1219_p7, %p1213_p5 }
  0x2a   : > { %1223 = shalt.err (!%p1220_p9)
}
  0x2b   : > { %s1356_s21 = smov 64   ;;  %s1357_s22 = smov 4  }
  0x2c   : > { %1052 = dma.hbm_to_vmem [thread:$0]  (!%p1455_p11), %s1625_s3, 2048, %s237_s14, [#allocation6], %s1356_s21, %s1356_s21, %s1357_s22  }
  0x2d   : > { %s1358_s10 = smov [#allocation8]   ;;  %s1481_s13 = sadd.s32 1, %s1350_s27  }
  0x2e   : > { %s252_s11 = sshll.u32 %s1358_s10, 4  ;;  %s253_s11 = int_to_ptr.vmem [resolvable:$true] %s252_s11 }
  0x2f   : > { %s1235_s15 = scalar_lea.vmem %s253_s11, 1024  ;;  %p1243_p10 = scmp.lt.s32.totalorder %s253_s11, %s253_s11 }
  0x30   : > { %p1236_p13 = scmp.ne.s32.totalorder %s253_s11, %s1235_s15  ;;  %p1244_p3 = scmp.lt.s32.totalorder %s1235_s15, %s1235_s15 }
  0x32   : > { %p1238_p0 = pnand %p1236_p13, %p1174_p12  ;;  %p1245_p7 = por %p1244_p3, %p1243_p10 }
  0x34   : > { %p1239_p5 = pneg %p1238_p0 }
  0x36   : > { %p1246_p9 = pnand %p1245_p7, %p1239_p5 }
  0x38   : > { %1249 = shalt.err (!%p1246_p9)
}
  0x39   : > { %1055 = dma.hbm_to_vmem [thread:$0]  (!%p1455_p11), %s1627_s5, 1024, %s253_s11, [#allocation9], %s1356_s21, %s1356_s21, %s1357_s22  }
  0x3a   : > { %s29_s19 = ssub.s32 %s1350_s27, %s1481_s13  ;;  %s32_s20 = sadd.s32 1, %s1346_s26 }
  0x3b   : > { %p30_p12 = scmp.eq.s32.totalorder %s29_s19, 0  ;;  %p39_p13 = scmp.ne.s32.totalorder %s1346_s26, %s1342_s25 }
  0x3c   : > { %p40_p0 = scmp.eq.s32.totalorder %s1350_s27, 0  ;;  %p1067_p5 = scmp.lt.s32.totalorder %s1350_s27, 2 }
  0x3d   : > { %s1499_s12 = scalar_select %p30_p12, %s1346_s26, %s32_s20  }
  0x3e   : > { %p41_p10 = por %p40_p0, %p39_p13  ;;  %p1503_p3 = por %p195_p2, %p39_p13 }
  0x3f   : > { %s269_s29 = sand.u32 1, %s1346_s26   ;;  %s970_s10 = sshll.u32 %s1350_s27, 8 }
  0x40   : > { %s1642_s23 = scalar_select %p1503_p3, 1, 0 }
  0x41   : > { %s919_s15 = sshll.u32 %s269_s29, 4  ;;  %s1512_s21 = scalar_lea.hbm %s1622_s0, %s970_s10 }
  0x42   : > { %s273_s22 = scalar_lea.vmem [#allocation2], %s919_s15  ;;  %p1514_p11 = pnand %p1067_p5, %p41_p10 }
  0x43   : > { %s280_s11 = sshll.u32 %s273_s22, 4  ;;  %s1520_s20 = scalar_lea.sflag [#allocation3], %s269_s29  ;;  %s1518_s11 = int_to_ptr.vmem [resolvable:$true] %s280_s11 }
  0x44   : > { %s1250_s16 = scalar_lea.hbm %s1512_s21, 256  ;;  %p1252_p7 = pneg %p1514_p11 }
  0x45   : > { %p1251_p2 = scmp.ne.s32.totalorder %s1512_s21, %s1250_s16  ;;  %s1255_s15 = scalar_lea.hbm %s1622_s0, 512 }
  0x46   : > { %p1256_p13 = scmp.lt.s32.totalorder %s1512_s21, %s1622_s0  ;;  %p1257_p0 = scmp.lt.s32.totalorder %s1255_s15, %s1250_s16 }
  0x47   : > { %p1253_p9 = pnand %p1252_p7, %p1251_p2 }
  0x48   : > { %p1258_p5 = por %p1257_p0, %p1256_p13 }
  0x49   : > { %p1254_p12 = pneg %p1253_p9 }
  0x4b   : > { %p1259_p10 = pnand %p1258_p5, %p1254_p12 }
  0x4d   : > { %1262 = shalt.err (!%p1259_p10)
}
  0x4e   : > { %s1263_s29 = scalar_lea.vmem %s1518_s11, 256  ;;  %s1359_s17 = smov [#allocation2]  }
  0x4f   : > { %p1264_p1 = scmp.ne.s32.totalorder %s1518_s11, %s1263_s29  ;;  %s1268_s1 = sshll.u32 %s1359_s17, 4  ;;  %s1269_s1 = int_to_ptr.vmem [resolvable:$false] %s1268_s1 }
  0x50   : > { %s1270_s10 = scalar_lea.vmem %s1269_s1, 512  ;;  %p1271_p9 = scmp.lt.s32.totalorder %s1518_s11, %s1269_s1 }
  0x51   : > { %p1266_p6 = pnand %p1264_p1, %p1252_p7  ;;  %p1272_p3 = scmp.lt.s32.totalorder %s1270_s10, %s1263_s29 }
  0x53   : > { %p1267_p2 = pneg %p1266_p6  ;;  %p1273_p4 = por %p1272_p3, %p1271_p9 }
  0x55   : > { %p1274_p8 = pnand %p1273_p4, %p1267_p2 }
  0x57   : > { %1277 = shalt.err (!%p1274_p8)
}
  0x58   : > { %s1644_s16 = smov 8   ;;  %s1645_s18 = smov 128  }
  0x59   : > { %1059 = dma.hbm_to_vmem [thread:$0]  (!%p1514_p11), %s1512_s21, 256, %s1518_s11, %s1520_s20, %s1645_s18, %s1645_s18, %s1644_s16  }
  0x5a   : > { %p1646_p1 = scmp.ne.s32.totalorder %s1639_s9, 0 }
  0x5b   : > { %s1547_s17 = sand.u32 (!%p1646_p1), 1, %s1342_s25   ;;  %p1647_p4 = scmp.ne.s32.totalorder (!%p1646_p1), %s1637_s30, 0 }
  0x5c   : > { %292 = sbr.rel (%p1646_p1) target bundleno = 1095 (0x447), region = 48  ;;  %s923_s1 = sshll.u32 (!%p1646_p1), %s1547_s17, 4 }
  0x5d   : > { %s295_s15 = scalar_lea.sflag (!%p1646_p1), [#allocation3], %s1547_s17  ;;  %s298_s14 = scalar_lea.vmem (!%p1646_p1), [#allocation2], %s923_s1 }
  0x61   : > { %1321 = dma.done.wait (%p1647_p4), %s295_s15, 256  }
  0x62   : > { %1323 = vsyncadd (%p1647_p4), %s295_s15, 4294967040  ;;  %p1648_p6 = scmp.eq.s32.totalorder %s1427_s28, 0 }
  0x64   : > { %1325 = dma.done.wait (%p1648_p6), [#allocation6], 3072   ;;  %p1649_p8 = pmov %p1648_p6 }
  0x65   : > { %p1650_p3 = pmov %p1648_p6 }
  0x66   : > { %1327 = vsyncadd (%p1649_p8), [#allocation6], 4294964224 }
  0x67   : > { %1329 = dma.done.wait (%p1650_p3), [#allocation9], 1024   ;;  %p1651_p11 = pmov %p1650_p3 }
  0x68   : > { %v1360_v0 = vmov 0   ;;  %v1116_v1 = vld [vmem:[#allocation5 + $0x34] ss:$8 sps:$4 sm:$0xff]   ;;  %v1118_v2 = vld [vmem:[#allocation5 + $0x30] ss:$8 sps:$4 sm:$0xff]   ;;  %vm407_vm0 = vcmask 523264   ;;  %v357_v28 = vlaneseq }
  0x69   : > { %1331 = vsyncadd (%p1651_p11), [#allocation9], 4294966272  ;;  %443 = vmatprep.mubr.bf16.mxu0 %v1360_v0  ;;  %419 = vmatprep.subr.bf16.mxu0 %v1116_v1  ;;  %v1119_v3 = vld [vmem:[#allocation5 + $0x24] ss:$8 sps:$4 sm:$0xff]   ;;  %v1121_v4 = vld [vmem:[#allocation5 + $0x20] ss:$8 sps:$4 sm:$0xff]  }
  0x6a   : > { %420 = vmatpush1.bf16.msra.mxu0 %v1118_v2  ;;  %v1122_v5 = vld [vmem:[#allocation5 + $0x14] ss:$8 sps:$4 sm:$0xff]   ;;  %v1124_v6 = vld [vmem:[#allocation5 + $0x10] ss:$8 sps:$4 sm:$0xff]   ;;  %v1125_v7 = vld [vmem:[#allocation5 + $0x4] ss:$8 sps:$4 sm:$0xff]  }
  0x6b   : > { %421 = vmatprep.subr.bf16.mxu0 %v1119_v3  ;;  %v1127_v8 = vld [vmem:[#allocation5] ss:$8 sps:$4 sm:$0xff]   ;;  %v1128_v12 = vld [vmem:[#allocation7 + $0x78] sm:$0xff]   ;;  %v1130_v14 = vld [vmem:[#allocation7 + $0x70] sm:$0xff]   ;;  %v358_v29 = vshrl.u32 %v357_v28, 7  ;;  %v1361_v62 = vmov 0.0  }
  0x6c   : > { %v344_v9 = vld [vmem:[%s298_s14] sm:$0xff]  ;;  %v345_v10 = vld [vmem:[%s298_s14 + $0x8] sm:$0xff]  ;;  %979 = vmatprep.subr.bf16.mxu1 %v1128_v12  ;;  %vm1362_vm1 = vmmov 0   ;;  %s927_s22 = sshll.u32 %s1547_s17, 3  ;;  %s973_s29 = sshll.u32 %s1427_s28, 7 }
  0x6d   : > { %v346_v11 = vpack.c.bf16 %v345_v10, %v344_v9  ;;  %v1129_v13 = vld [vmem:[#allocation7 + $0x38] sm:$0xff]   ;;  %v1131_v15 = vld [vmem:[#allocation7 + $0x30] sm:$0xff]   ;;  %v1132_v16 = vld [vmem:[#allocation7 + $0x68] sm:$0xff]   ;;  %v359_v30 = vsub.s32 0, %v358_v29  ;;  %v363_v32 = vsub.s32 1, %v358_v29  ;;  %s340_s10 = scalar_lea.vmem [#allocation10], %s927_s22  ;;  %s1577_s15 = scalar_lea.hbm %s1629_s7, %s973_s29 }
  0x6e   : > { %422 = vmatpush1.bf16.msra.mxu0 %v1121_v4  ;;  %980 = vmatpush3.bf16.msra.mxu1 %v1129_v13  ;;  %v1133_v17 = vld [vmem:[#allocation7 + $0x28] sm:$0xff]   ;;  %v1134_v18 = vld [vmem:[#allocation7 + $0x60] sm:$0xff]   ;;  %v1136_v20 = vld [vmem:[#allocation7 + $0x58] sm:$0xff]   ;;  %s811_s16 = sshll.u32 %s340_s10, 4  ;;  %s798_s14 = scalar_lea.sflag [#allocation4], %s1547_s17  ;;  %s1579_s16 = int_to_ptr.vmem [resolvable:$true] %s811_s16 }
  0x6f   : > { %423 = vmatprep.subr.bf16.mxu0 %v1122_v5  ;;  %981 = vmatprep.subr.bf16.mxu1 %v1130_v14  ;;  %v1135_v19 = vld [vmem:[#allocation7 + $0x20] sm:$0xff]   ;;  %v1137_v21 = vld [vmem:[#allocation7 + $0x18] sm:$0xff]   ;;  %v1138_v22 = vld [vmem:[#allocation7 + $0x50] sm:$0xff]   ;;  %s1278_s30 = scalar_lea.vmem %s1579_s16, 128  ;;  %p1652_p12 = scmp.ne.s32.totalorder %s1642_s23, 0 }
  0x70   : > { %v1139_v23 = vld [vmem:[#allocation7 + $0x10] sm:$0xff]   ;;  %v1140_v24 = vld [vmem:[#allocation7 + $0x48] sm:$0xff]   ;;  %v1142_v26 = vld [vmem:[#allocation7 + $0x40] sm:$0xff]   ;;  %p1279_p7 = scmp.ne.s32.totalorder %s1579_s16, %s1278_s30  ;;  %s1363_s28 = smov [#allocation10]  }
  0x71   : > { %v1141_v25 = vld [vmem:[#allocation7 + $0x8] sm:$0xff]   ;;  %v1143_v27 = vld [vmem:[#allocation7] sm:$0xff]   ;;  %v1144_v61 = vld [vmem:[#allocation8 + $0x38] sm:$0xff]   ;;  %s1282_s9 = sshll.u32 %s1363_s28, 4  ;;  %s1283_s9 = int_to_ptr.vmem [resolvable:$false] %s1282_s9 }
  0x72   : > { %424 = vmatpush1.bf16.msra.mxu0 %v1124_v6  ;;  %982 = vmatpush3.bf16.msra.mxu1 %v1131_v15  ;;  %v355_v31 = vld [vmem:[%s1624_s2] sm:$0x3]  ;;  %v1145_v63 = vld [vmem:[#allocation8 + $0x30] sm:$0xff]   ;;  %v1146_v0 = vld [vmem:[#allocation8 + $0x28] sm:$0xff]   ;;  %p1280_p13 = pnand %p1279_p7, %p1652_p12  ;;  %s1284_s21 = scalar_lea.vmem %s1283_s9, 256 }
  0x73   : > { %425 = vmatprep.subr.bf16.mxu0 %v1125_v7  ;;  %983 = vmatprep.subr.bf16.mxu1 %v1132_v16  ;;  %v360_v33 = vrot.slane %v355_v31, %v359_v30  ;;  %v364_v34 = vrot.slane %v355_v31, %v363_v32  ;;  %v1147_v1 = vld [vmem:[#allocation8 + $0x20] sm:$0xff]   ;;  %v1148_v2 = vld [vmem:[#allocation8 + $0x18] sm:$0xff]   ;;  %v1149_v3 = vld [vmem:[#allocation8 + $0x10] sm:$0xff]   ;;  %p1285_p5 = scmp.lt.s32.totalorder %s1579_s16, %s1283_s9  ;;  %p1286_p10 = scmp.lt.s32.totalorder %s1284_s21, %s1278_s30 }
  0x74   : > { %v1150_v4 = vld [vmem:[#allocation8 + $0x8] sm:$0xff]   ;;  %v1151_v5 = vld [vmem:[#allocation8] sm:$0xff]   ;;  %p1281_p0 = pneg %p1280_p13 }
  0x75   : > { %v937_v7 = vld [vmem:[%s1626_s4] ss:$0 sm:$0xff]  ;;  %p1287_p2 = por %p1286_p10, %p1285_p5 }
  0x76   : > { %426 = vmatpush1.bf16.msra.mxu0 %v1127_v8  ;;  %984 = vmatpush3.bf16.msra.mxu1 %v1133_v17 }
  0x77   : > { %985 = vmatprep.subr.bf16.mxu1 %v1134_v18  ;;  %1010 = vmatprep.subr.bf16.mxu0 %v1361_v62  ;;  %p1288_p9 = pnand %p1287_p2, %p1281_p0 }
  0x79   : > { %936 = vmatmul.mubr.msk.bf16.vlgmr.msra.gmra.mxu0 %vm407_vm0, %v346_v11 }
  0x7a   : > { %986 = vmatpush3.bf16.msra.mxu1 %v1135_v19  ;;  %1011 = vmatpush3.bf16.msra.mxu0 %v1144_v61 }
  0x7b   : > { %987 = vmatprep.subr.bf16.mxu1 %v1136_v20  ;;  %1012 = vmatprep.subr.bf16.mxu0 %v1361_v62 }
  0x7c   : > { %1026 = vmatprep.mubr.msk.bf16.mxu0 %vm1362_vm1, %v1361_v62 }
  0x7e   : > { %988 = vmatpush3.bf16.msra.mxu1 %v1137_v21  ;;  %1013 = vmatpush3.bf16.msra.mxu0 %v1145_v63 }
  0x7f   : > { %989 = vmatprep.subr.bf16.mxu1 %v1138_v22  ;;  %1014 = vmatprep.subr.bf16.mxu0 %v1361_v62 }
  0x82   : > { %990 = vmatpush3.bf16.msra.mxu1 %v1139_v23  ;;  %1015 = vmatpush3.bf16.msra.mxu0 %v1146_v0 }
  0x83   : > { %991 = vmatprep.subr.bf16.mxu1 %v1140_v24  ;;  %1016 = vmatprep.subr.bf16.mxu0 %v1361_v62  ;;  %v954_v24 = vld [vmem:[%s1628_s6] ss:$0 sm:$0xff] }
  0x86   : > { %992 = vmatpush3.bf16.msra.mxu1 %v1141_v25  ;;  %1017 = vmatpush3.bf16.msra.mxu0 %v1147_v1 }
  0x87   : > { %993 = vmatprep.subr.bf16.mxu1 %v1142_v26  ;;  %1018 = vmatprep.subr.bf16.mxu0 %v1361_v62 }
  0x8a   : > { %994 = vmatpush3.bf16.msra.mxu1 %v1143_v27  ;;  %1019 = vmatpush3.bf16.msra.mxu0 %v1148_v2 }
  0x8b   : > { %1020 = vmatprep.subr.bf16.mxu0 %v1361_v62 }
  0x8e   : > { %1021 = vmatpush3.bf16.msra.mxu0 %v1149_v3 }
  0x8f   : > { %1022 = vmatprep.subr.bf16.mxu0 %v1361_v62 }
  0x92   : > { %1023 = vmatpush3.bf16.msra.mxu0 %v1150_v4 }
  0x93   : > { %1024 = vmatprep.subr.bf16.mxu0 %v1361_v62 }
  0x96   : > { %1025 = vmatpush3.bf16.msra.mxu0 %v1151_v5 }
 0x139   : > { %v445_v35 = vpop.f32.mrf.mxu0 }
 0x13a   : > { %v446_v36 = vadd.f32 %v445_v35, %v360_v33 }
 0x13b   : > { %v447_v37 = vpop.f32.mrf.mxu0 }
 0x13c   : > { %v448_v38 = vadd.f32 %v447_v37, %v364_v34  ;;  %v454_v39 = vmul.f32 0.5, %v446_v36 }
 0x13d   : > { %v449_v40 = vpop.f32.mrf.mxu0 }
 0x13e   : > { %v455_v41 = vmul.f32 0.5, %v448_v38  ;;  %v450_v42 = vadd.f32 %v449_v40, %v360_v33 }
 0x13f   : > { %v451_v43 = vpop.f32.mrf.mxu0 }
 0x140   : > { %1152 = vtanh.f32 %v455_v41  ;;  %v456_v44 = vmul.f32 0.5, %v450_v42  ;;  %v452_v45 = vadd.f32 %v451_v43, %v364_v34 }
 0x141   : > { %1154 = vtanh.f32 %v454_v39 }
 0x142   : > { %1156 = vtanh.f32 %v456_v44  ;;  %v457_v46 = vmul.f32 0.5, %v452_v45 }
 0x144   : > { %1158 = vtanh.f32 %v457_v46 }
 0x14d   : > { %v1153_v47 = vpop.eup %1152 }
 0x14e   : > { %v1155_v48 = vpop.eup %1154  ;;  %v463_v51 = vmul.f32 0.5, %v1153_v47 }
 0x14f   : > { %v1157_v49 = vpop.eup %1156  ;;  %v462_v53 = vmul.f32 0.5, %v1155_v48 }
 0x150   : > { %v464_v50 = vmul.f32 0.5, %v1157_v49  ;;  %v467_v56 = vadd.f32 0.5, %v463_v51 }
 0x151   : > { %v1159_v52 = vpop.eup %1158  ;;  %v466_v58 = vadd.f32 0.5, %v462_v53 }
 0x152   : > { %v465_v54 = vmul.f32 0.5, %v1159_v52  ;;  %v468_v55 = vadd.f32 0.5, %v464_v50 }
 0x154   : > { %v469_v57 = vadd.f32 0.5, %v465_v54  ;;  %v470_v60 = vpack.c.bf16 %v468_v55, %v466_v58 }
 0x156   : > { %v471_v59 = vpack.c.bf16 %v469_v57, %v467_v56 }
 0x158   : > { %639 = vmatprep.mubr.bf16.mxu1 %v471_v59 }
 0x159   : > { %640 = vmatmul.mubr.bf16.vlgmr.msra.gmra.mxu1 %v470_v60 }
 0x219   : > { %v995_v6 = vpop.f32.mrf.mxu1 }
 0x21b   : > { %v996_v8 = vpop.f32.mrf.mxu1 }
 0x21c   : > { %v997_v9 = vadd.f32 %v996_v8, %v995_v6 }
 0x21d   : > { %v998_v10 = vpop.f32.mrf.mxu1 }
 0x21e   : > { %v642_v11 = vadd.f32 %v997_v9, %v937_v7 }
 0x21f   : > { %v999_v12 = vpop.f32.mrf.mxu1 }
 0x220   : > { %v648_v13 = vmul.f32 0.5, %v642_v11  ;;  %v1000_v14 = vadd.f32 %v999_v12, %v998_v10 }
 0x222   : > { %1160 = vtanh.f32 %v648_v13  ;;  %v645_v15 = vadd.f32 %v1000_v14, %v937_v7 }
 0x224   : > { %v649_v16 = vmul.f32 0.5, %v645_v15 }
 0x226   : > { %1162 = vtanh.f32 %v649_v16 }
 0x22f   : > { %v1161_v17 = vpop.eup %1160 }
 0x230   : > { %v652_v18 = vmul.f32 0.5, %v1161_v17 }
 0x232   : > { %v654_v21 = vadd.f32 0.5, %v652_v18 }
 0x233   : > { %v1163_v19 = vpop.eup %1162 }
 0x234   : > { %v653_v20 = vmul.f32 0.5, %v1163_v19 }
 0x236   : > { %v655_v22 = vadd.f32 0.5, %v653_v20 }
 0x238   : > { %v656_v23 = vpack.c.bf16 %v655_v22, %v654_v21 }
 0x23a   : > { %1027 = vmatmul.mubr.bf16.vlgmr.msra.gmra.mxu0 %v656_v23 }
 0x2fa   : > { %v762_v25 = vpop.f32.mrf.mxu0 }
 0x2fb   : > { %v763_v26 = vadd.f32 %v954_v24, %v762_v25 }
 0x2fc   : > { %v1028_v27 = vpop.f32.mrf.mxu0 }
 0x2fd   : > { %769 = vmax.xlane.f32.xlu0 %v763_v26 }
 0x2fe   : > { %v765_v28 = vpop.f32.mrf.mxu0 }
 0x2ff   : > { %v766_v29 = vadd.f32 %v954_v24, %v765_v28 }
 0x300   : > { %v1029_v30 = vpop.f32.mrf.mxu0 }
 0x301   : > { %771 = vmax.xlane.f32.xlu0 %v766_v29 }
 0x386   : > { %v770_v31 = vpop.xlane.xlu0 %769 }
 0x387   : > { %v773_v32 = vsub.f32 %v763_v26, %v770_v31 }
 0x389   : > { %v775_v33 = vmul.f32 1.442695, %v773_v32 }
 0x38a   : > { %v772_v34 = vpop.xlane.xlu0 %771 }
 0x38b   : > { %1164 = vpow2.f32 %v775_v33  ;;  %v774_v35 = vsub.f32 %v766_v29, %v772_v34 }
 0x38d   : > { %v777_v36 = vmul.f32 1.442695, %v774_v35 }
 0x38f   : > { %1166 = vpow2.f32 %v777_v36 }
 0x398   : > { %v1165_v37 = vpop.eup %1164 }
 0x399   : > { %779 = vadd.xlane.f32.xlu1 %v1165_v37 }
 0x39c   : > { %v1167_v38 = vpop.eup %1166 }
 0x39d   : > { %781 = vadd.xlane.f32.xlu1 %v1167_v38 }
 0x422   : > { %v780_v39 = vpop.xlane.xlu1 %779 }
 0x423   : > { %1168 = vrcp.f32 %v780_v39 }
 0x426   : > { %v782_v40 = vpop.xlane.xlu1 %781 }
 0x427   : > { %1170 = vrcp.f32 %v782_v40 }
 0x430   : > { %v1169_v41 = vpop.eup %1168 }
 0x431   : > { %v784_v43 = vmul.f32 %v1169_v41, %v1165_v37 }
 0x434   : > { %v1171_v42 = vpop.eup %1170 }
 0x435   : > { %v786_v44 = vmul.f32 %v1171_v42, %v1167_v38 }
 0x437   : > { %v977_v45 = vpack.c.bf16 %v786_v44, %v784_v43 }
 0x439   : > { %978 = vst [vmem:[%s340_s10] sm:$0xff] %v977_v45  }
 0x43a   : > { %1291 = shalt.err (!%p1288_p9)
}
 0x43b   : > { %s1292_s11 = scalar_lea.hbm %s1577_s15, 128  ;;  %s1296_s22 = scalar_lea.hbm %s1629_s7, 256 }
 0x43c   : > { %p1293_p1 = scmp.ne.s32.totalorder %s1577_s15, %s1292_s11  ;;  %p1297_p8 = scmp.lt.s32.totalorder %s1577_s15, %s1629_s7 }
 0x43d   : > { %p1298_p3 = scmp.lt.s32.totalorder %s1296_s22, %s1292_s11 }
 0x43e   : > { %p1294_p4 = pnand %p1293_p1, %p1652_p12 }
 0x43f   : > { %p1299_p11 = por %p1298_p3, %p1297_p8 }
 0x440   : > { %p1295_p6 = pneg %p1294_p4 }
 0x442   : > { %p1300_p7 = pnand %p1299_p11, %p1295_p6 }
 0x444   : > { %1303 = shalt.err (!%p1300_p7)
}
 0x445   : > { %s1364_s18 = smov 64   ;;  %s1365_s1 = smov 4  }
 0x446   : > { %1044 = dma.vmem_to_hbm [thread:$0]  (%p1652_p12), %s1579_s16, 128, %s1577_s15, %s798_s14, %s1364_s18, %s1364_s18, %s1365_s1  }
 0x447 PF: > { %s826_s30 = sand.u32 1, %s1338_s24   ;;  %p1653_p13 = scmp.ne.s32.totalorder %s1638_s8, 0 }
 0x448   : > { %p1654_p0 = scmp.ge.s32.totalorder %s1350_s27, 2  ;;  %s827_s28 = scalar_lea.sflag [#allocation4], %s826_s30 }
 0x44a   : > { %p1061_p5 = pnand %p1654_p0, %p1653_p13 }
 0x44c   : > { %p1062_p10 = pneg %p1061_p5 }
 0x44e   : > { %1333 = dma.done.wait (%p1062_p10), %s827_s28, 128  }
 0x44f   : > { %1335 = vsyncadd (%p1062_p10), %s827_s28, 4294967168  ;;  %p22_p2 = scmp.ge.s32.totalorder %s1481_s13, 4   ;;  %s1655_s24 = smov %s1342_s25 }
 0x450   : > { %s1656_s25 = smov %s1346_s26  ;;  %s1657_s26 = smov %s1499_s12 }
 0x451   : > { %s1658_s27 = smov %s1481_s13  ;;  %24 = sbr.rel (!%p22_p2) target bundleno = 9 (0x9), region = 105 }
 0x456   :  { %832 = vsyncpa [#allocation3], 1 }
 0x457   :  { %834 = vsyncpa [#allocation3 + $0x1], 1 }
 0x458   :  { %835 = vsyncpa [#allocation6], 1 }
 0x459   :  { %836 = vsyncpa [#allocation9], 1 }
 0x45a   :  { %837 = vsyncpa [#allocation4], 1 }
 0x45b   :  { %839 = vsyncpa [#allocation4 + $0x1], 1 }

</bundles_post_ra>
